<compile_context>
chip_gen: v7x
topology: tpu7x:2x2x1
jax: 0.10.0
libtpu: 0.0.40
codegen_flags: <defaults>
</compile_context>

<pallas_src>
import jax
import jax.numpy as jnp
from jax.experimental import pallas as pl
from jax.experimental.pallas import tpu as pltpu


def _pos_embed_kernel(w_ref, o_ref):
    # w_ref: (n_splines, d_model) full weight table, VMEM-resident (one copy)
    # o_ref: (TB, n_splines, d_model) output slab = TB batch rows per step
    # The broadcast fill is VPU/vst work fully hidden under the output DMA.
    o_ref[...] = jnp.broadcast_to(w_ref[...][None, :, :], o_ref.shape)


def _tpu_generation():
    """Best-effort TPU generation sniff; 'unknown' falls back to a safe config."""
    try:
        kind = jax.devices()[0].device_kind.lower()
    except Exception:
        return "unknown"
    if "v5" in kind or "5 lite" in kind:
        return "v5e"
    if "v6" in kind or "6 lite" in kind:
        return "v6e"
    if "v7" in kind or "7x" in kind:
        return "v7x"
    return "unknown"


# target_block_bytes : output bytes per grid step (amortizes ~0.35 us/step)
# prefer_even_steps  : 2-TensorCore chips want an even (>=2) parallel step count
# min_step_bytes     : smallest per-step HBM write still worth a megacore split
_GEN_CONFIG = {
    "v5e":     dict(target_block_bytes=4 << 20, prefer_even_steps=False, min_step_bytes=256 << 10),
    "v6e":     dict(target_block_bytes=4 << 20, prefer_even_steps=False, min_step_bytes=256 << 10),
    "v7x":     dict(target_block_bytes=8 << 20, prefer_even_steps=True,  min_step_bytes=64 << 10),
    "unknown": dict(target_block_bytes=4 << 20, prefer_even_steps=False, min_step_bytes=256 << 10),
}


def _pick_batch_block(b, row_bytes, gen):
    """Pick TB (batch rows per grid step), generation-aware."""
    cfg = _GEN_CONFIG.get(gen, _GEN_CONFIG["unknown"])
    tb = max(1, cfg["target_block_bytes"] // row_bytes)
    tb = min(tb, b)
    if cfg["prefer_even_steps"] and b >= 2:
        # v7x: the batch-chunk axis is "parallel" and sharded across the two
        # TensorCores -- aim for an even step count >= 2 so neither core idles,
        # as long as each step still writes a reasonably large slab.
        steps = pl.cdiv(b, tb)
        want = max(2, 2 * pl.cdiv(steps, 2))          # round steps up to even
        cand = pl.cdiv(b, want)
        if cand >= 1 and cand * row_bytes >= cfg["min_step_bytes"]:
            tb = cand
    return tb


def positional_embedding(x, weight):
    """Replicates the embedding table across the batch dimension of x.

    x:      (B, C, L)  -- only B is used (matches PyTorch `b, _, _ = x.size()`)
    weight: (n_splines, d_model)
    returns (B, n_splines, d_model)  == weight.repeat(B, 1, 1)
    """
    b = x.shape[0]
    n_splines, d_model = weight.shape
    itemsize = jnp.dtype(weight.dtype).itemsize
    row_bytes = n_splines * d_model * itemsize

    gen = _tpu_generation()
    tb = _pick_batch_block(b, row_bytes, gen)
    num_steps = pl.cdiv(b, tb)
    block_bytes = tb * row_bytes

    # Pure write-back kernel: a third output buffer keeps one more HBM write
    # DMA in flight, but only pays off when the grid is deep enough.
    out_buffers = 3 if num_steps >= 4 else 2
    out_spec_kwargs = {}
    if out_buffers > 2:
        out_spec_kwargs["pipeline_mode"] = pl.Buffered(out_buffers)

    # Explicit scoped-VMEM budget: >= 2x what we need, capped at 32 MiB
    # (<= physical / default scoped VMEM on v5e, v6e and v7x).
    vmem_needed = out_buffers * block_bytes + row_bytes
    vmem_limit = int(min(max(2 * vmem_needed, 16 << 20), 32 << 20))

    cost = pl.CostEstimate(
        flops=0,
        transcendentals=0,
        bytes_accessed=b * row_bytes + row_bytes,   # output write + weight read
    )

    return pl.pallas_call(
        _pos_embed_kernel,
        out_shape=jax.ShapeDtypeStruct((b, n_splines, d_model), weight.dtype),
        grid_spec=pltpu.PrefetchScalarGridSpec(
            num_scalar_prefetch=0,
            grid=(num_steps,),
            in_specs=[
                # Whole weight table resident in VMEM for the full kernel:
                # single DMA, no per-step re-fetch, no double buffer.
                pl.BlockSpec(memory_space=pltpu.MemorySpace.VMEM),
            ],
            out_specs=pl.BlockSpec(
                (tb, n_splines, d_model), lambda i: (i, 0, 0),
                **out_spec_kwargs,
            ),
        ),
        compiler_params=pltpu.CompilerParams(
            dimension_semantics=("parallel",),
            vmem_limit_bytes=vmem_limit,
        ),
        cost_estimate=cost,
    )(weight)


if __name__ == "__main__":
    key = jax.random.PRNGKey(0)

    # Module config (small): n_splines=8, d_model=256 (nn.Embedding weight shape)
    n_splines, d_model = 8, 256
    batch, channels, length = 2, 4, 16

    k_w, k_x = jax.random.split(key)
    # Deterministic "embedding weight" init (nn.Embedding default is N(0,1))
    weight = jax.random.normal(k_w, (n_splines, d_model), dtype=jnp.float32)
    # Input x only contributes its batch size in the forward pass
    x = jax.random.normal(k_x, (batch, channels, length), dtype=jnp.float32)

    out = positional_embedding(x, weight)
    out = jax.block_until_ready(out)

    # Reference check: weight.repeat(b, 1, 1) == broadcast of weight over batch
    ref = jnp.broadcast_to(weight[None, :, :], (batch, n_splines, d_model))
    assert out.shape == (batch, n_splines, d_model), out.shape
    assert out.dtype == weight.dtype
    assert jnp.array_equal(out, ref)

    print("KERNEL_OK")
</pallas_src>

<mosaic_0001>
module attributes {stable_mosaic.version = 11 : i64} {
  func.func @_pos_embed_kernel(%arg0: i32, %arg1: memref<8x256xf32, #tpu.memory_space<vmem>>, %arg2: memref<2x8x256xf32, #tpu.memory_space<vmem>>) attributes {dimension_semantics = [#tpu.dimension_semantics<parallel>], iteration_bounds = array<i64: 1>, scalar_prefetch = 0 : i64, scratch_operands = 0 : i64, tpu.core_type = #tpu.core_type<tc>, window_params = [{pipeline_mode = #tpu.pipeline_mode<synchronous>, transform_indices = @transform_0, window_bounds = array<i64: 8, 256>}, {transform_indices = @transform_1, window_bounds = array<i64: 2, 8, 256>}]} {
    %c0 = arith.constant 0 : index
    %c0_0 = arith.constant 0 : index
    %0 = vector.load %arg1[%c0, %c0_0] : memref<8x256xf32, #tpu.memory_space<vmem>>, vector<8x256xf32>
    %1 = vector.shape_cast %0 : vector<8x256xf32> to vector<1x8x256xf32>
    %2 = vector.shape_cast %1 : vector<1x8x256xf32> to vector<1x8x256xf32>
    %3 = vector.broadcast %2 : vector<1x8x256xf32> to vector<2x8x256xf32>
    %c0_1 = arith.constant 0 : index
    %c0_2 = arith.constant 0 : index
    %c0_3 = arith.constant 0 : index
    %4 = vector.load %arg2[%c0_1, %c0_2, %c0_3] : memref<2x8x256xf32, #tpu.memory_space<vmem>>, vector<2x8x256xf32>
    tpu.vector_store %arg2[%c0_1, %c0_2, %c0_3], %3 {strides = array<i32>} : memref<2x8x256xf32, #tpu.memory_space<vmem>>, vector<2x8x256xf32>,
    return
  }
  func.func @transform_0(%arg0: i32) -> (i32, i32) {
    %c0_i32 = arith.constant 0 : i32
    %c0_i32_0 = arith.constant 0 : i32
    %c0_i32_1 = arith.constant 0 : i32
    return %c0_i32, %c0_i32_0 : i32, i32
  }
  func.func @transform_1(%arg0: i32) -> (i32, i32, i32) {
    %c0_i32 = arith.constant 0 : i32
    %c0_i32_0 = arith.constant 0 : i32
    %c0_i32_1 = arith.constant 0 : i32
    return %arg0, %c0_i32, %c0_i32_0 : i32, i32, i32
  }
}

</mosaic_0001>

<bundles_post_ra>
// kernel: tpu_custom_call.1
= control target key start
LH: loop header
LB: loop body
LE: loop exit
PB: predicated region body
PF: predicated region fallthrough
CT: control target
= control target key end

     0   :  { %6 = vsyncpa [#allocation3], 0  ;;  %s134_s0 = inlined_call_operand.hbm [shape: f32[8,256], index: 0, kind: input, shape index: {}]   ;;  %s135_s1 = inlined_call_operand.hbm [shape: f32[2,8,256], index: 1, kind: output, shape index: {}]  }
   0x1   :  { %7 = vsyncpa [#allocation4], 0  ;;  %s96_s6 = smov [#allocation2]   ;;  %s48_s10 = scalar_lea.hbm %s134_s0, 256 }
   0x2   :  { %s14_s7 = sshll.u32 %s96_s6, 4  ;;  %p49_p0 = scmp.ne.s32.totalorder %s134_s0, %s48_s10  ;;  %s15_s7 = int_to_ptr.vmem [resolvable:$true] %s14_s7 }
   0x3   :  { %p52_p1 = scmp.lt.u32.totalorder %s48_s10, %s134_s0 }
   0x5   :  { %p54_p2 = pnand %p52_p1, %p49_p0 }
   0x7   :  { %57 = shalt.err (!%p54_p2)
}
   0x8   :  { %s58_s15 = scalar_lea.vmem %s15_s7, 256  ;;  %p63_p4 = scmp.lt.s32.totalorder %s15_s7, %s15_s7 }
   0x9   :  { %p59_p3 = scmp.ne.s32.totalorder %s15_s7, %s58_s15  ;;  %p64_p5 = scmp.lt.s32.totalorder %s58_s15, %s58_s15 }
   0xb   :  { %p65_p6 = por %p64_p5, %p63_p4 }
   0xd   :  { %p66_p7 = pnand %p65_p6, %p59_p3 }
   0xf   :  { %69 = shalt.err (!%p66_p7)
}
  0x10   :  { %17 = dma.hbm_to_vmem [thread:$0]  %s134_s0, 256, %s15_s7, [#allocation3]  }
  0x11   :  { %92 = dma.done.wait [#allocation3], 256  }
  0x12   :  { %93 = vsyncadd [#allocation3], 4294967040  ;;  %s97_s18 = smov [#allocation5]   ;;  %v21_v0 = vld [vmem:[#allocation2] sm:$0xff]  ;;  %v22_v1 = vld [vmem:[#allocation2 + $0x8] sm:$0xff] }
  0x13   :  { %s32_s19 = sshll.u32 %s97_s18, 4  ;;  %23 = vst [vmem:[#allocation5] sm:$0xff] %v21_v0  ;;  %25 = vst [vmem:[#allocation5 + $0x10] sm:$0xff] %v21_v0  ;;  %s33_s19 = int_to_ptr.vmem [resolvable:$true] %s32_s19 }
  0x14   :  { %24 = vst [vmem:[#allocation5 + $0x8] sm:$0xff] %v22_v1  ;;  %26 = vst [vmem:[#allocation5 + $0x18] sm:$0xff] %v22_v1  ;;  %s70_s20 = scalar_lea.vmem %s33_s19, 512  ;;  %p75_p9 = scmp.lt.s32.totalorder %s33_s19, %s33_s19 }
  0x15   :  { %p71_p8 = scmp.ne.s32.totalorder %s33_s19, %s70_s20  ;;  %p76_p10 = scmp.lt.s32.totalorder %s70_s20, %s70_s20 }
  0x17   :  { %p77_p11 = por %p76_p10, %p75_p9 }
  0x19   :  { %p78_p12 = pnand %p77_p11, %p71_p8 }
  0x1b   :  { %81 = shalt.err (!%p78_p12)
}
  0x1c   :  { %s82_s22 = scalar_lea.hbm %s135_s1, 512 }
  0x1d   :  { %p83_p13 = scmp.ne.s32.totalorder %s135_s1, %s82_s22  ;;  %p86_p0 = scmp.lt.u32.totalorder %s82_s22, %s135_s1 }
  0x1f   :  { %p88_p1 = pnand %p86_p0, %p83_p13 }
  0x21   :  { %91 = shalt.err (!%p88_p1)
}
  0x22   :  { %s98_s27 = smov 256   ;;  %s99_s28 = smov 16  }
  0x23   :  { %38 = dma.vmem_to_hbm [thread:$0]  %s33_s19, 512, %s135_s1, [#allocation4], %s98_s27, %s98_s27, %s99_s28  }
  0x24   :  { %94 = dma.done.wait [#allocation4], 512  }
  0x25   :  { %95 = vsyncadd [#allocation4], 4294966784 }
  0x26   :  { %42 = vsyncpa [#allocation3], 1 }
  0x27   :  { %43 = vsyncpa [#allocation4], 1 }

</bundles_post_ra>
